<compile_context>
chip_gen: v7x
topology: tpu7x:2x2x1
jax: 0.10.0
libtpu: 0.0.40
codegen_flags: <defaults>
</compile_context>

<pallas_src>
import functools
import math

import numpy as np
import jax
import jax.numpy as jnp
from jax.experimental import pallas as pl
from jax.experimental.pallas import tpu as pltpu

VMEM_LIMIT = 32 * 1024 * 1024  # >= scoped default on every chip generation
SMEM_SPEC = pl.BlockSpec(memory_space=pltpu.MemorySpace.SMEM)


def _round_up(x, m):
    return ((x + m - 1) // m) * m


def _row_tile(n, cap=512):
    if n <= cap:
        return n
    for t in (cap, 256, 128, 64, 32, 16, 8):
        if n % t == 0:
            return t
    return n


def _dst_tile(n):
    # Prefer <=256 and multiples of 32 so large graphs get >=2 tiles (both v7x TCs busy)
    # and the mask bias block keeps a friendly second-minor dim.
    if n <= 256:
        return n
    for t in (256, 128, 64, 32, 16, 8):
        if n % t == 0:
            return t
    return n


def _src_tile(n):
    if n <= 512:
        return n
    for t in (512, 256, 128):
        if n % t == 0:
            return t
    return n


# ----------------------------- Pallas kernels ------------------------------

def _proj_kernel(x_ref, w_ref, b_ref, y_ref):
    # One wide matmul per node type: [Wq | Wk@A_r*pri/sqrt_dk | Wv@M_r | ...] padded
    # to a multiple of 128 lanes. x cast to bf16 in-kernel; bias added in f32.
    x = x_ref[...].astype(jnp.bfloat16)
    y = jnp.dot(x, w_ref[...], preferred_element_type=jnp.float32) + b_ref[...]
    y_ref[...] = y.astype(y_ref.dtype)


def fused_project(x, w_bf16, b_f32):
    n, in_dim = x.shape
    width = w_bf16.shape[1]
    tile_n = _row_tile(n)
    grid = (pl.cdiv(n, tile_n),)
    return pl.pallas_call(
        _proj_kernel,
        out_shape=jax.ShapeDtypeStruct((n, width), jnp.bfloat16),
        grid=grid,
        in_specs=[
            pl.BlockSpec((tile_n, in_dim), lambda i: (i, 0)),
            pl.BlockSpec((in_dim, width), lambda i: (0, 0)),
            pl.BlockSpec((1, width), lambda i: (0, 0)),
        ],
        out_specs=pl.BlockSpec((tile_n, width), lambda i: (i, 0)),
        compiler_params=pltpu.CompilerParams(
            dimension_semantics=("parallel",), vmem_limit_bytes=VMEM_LIMIT),
    )(x, w_bf16, b_f32)


def _edge_kernel(q_ref, k_ref, v_ref, bias_ref, flag_ref, t_ref,
                 t_acc, m_sc, l_sc, acc_sc, *, n_heads, d_k):
    # Grid: (dst_tile i, relation r, src_tile s).  q/k/v are flat lane-dense
    # (tile, H*d_k) bf16; bias is an additive bf16 mask (0 / -1e30); flag marks dst
    # rows with >=1 incoming edge for relation r (overwrite semantics).
    r = pl.program_id(1)
    s = pl.program_id(2)
    last_r = pl.num_programs(1) - 1
    last_s = pl.num_programs(2) - 1

    @pl.when(jnp.logical_and(r == 0, s == 0))
    def _init_t():
        t_acc[...] = jnp.zeros_like(t_acc)

    @pl.when(s == 0)
    def _init_softmax():
        m_sc[...] = jnp.full_like(m_sc, -jnp.inf)
        l_sc[...] = jnp.zeros_like(l_sc)
        acc_sc[...] = jnp.zeros_like(acc_sc)

    bias = bias_ref[0].astype(jnp.float32)        # (tile_nd, tile_ns), shared by heads
    qf = q_ref[...]                               # (tile_nd, D) bf16
    kf = k_ref[0]                                 # (tile_ns, D) bf16
    vf = v_ref[0]                                 # (tile_ns, D) bf16

    # Heads as lane-column blocks: everything stays 2-D, output columns are written
    # directly into the flat accumulator (lane-dense, no transposes).
    for h in range(n_heads):
        c0 = h * d_k
        qh = qf[:, c0:c0 + d_k]
        kh = kf[:, c0:c0 + d_k]
        vh = vf[:, c0:c0 + d_k]
        s_h = jax.lax.dot_general(
            qh, kh, (((1,), (1,)), ((), ())),
            preferred_element_type=jnp.float32) + bias        # (tile_nd, tile_ns) f32
        m_prev = m_sc[:, h:h + 1]
        m_new = jnp.maximum(m_prev, jnp.max(s_h, axis=-1, keepdims=True))
        corr = jnp.exp(m_prev - m_new)
        p = jnp.exp(s_h - m_new)                              # masked entries -> 0
        l_sc[:, h:h + 1] = corr * l_sc[:, h:h + 1] + jnp.sum(p, axis=-1, keepdims=True)
        m_sc[:, h:h + 1] = m_new
        pv = jax.lax.dot_general(
            p.astype(jnp.bfloat16), vh, (((1,), (0,)), ((), ())),
            preferred_element_type=jnp.float32)               # (tile_nd, d_k) f32
        acc_sc[:, c0:c0 + d_k] = corr * acc_sc[:, c0:c0 + d_k] + pv

    @pl.when(s == last_s)
    def _finalize_relation():
        has_edge = flag_ref[0] > 0.5                          # (tile_nd, 1)
        for h in range(n_heads):
            c0 = h * d_k
            inv_l = pl.reciprocal(l_sc[:, h:h + 1], approx=True)
            agg = acc_sc[:, c0:c0 + d_k] * inv_l
            # overwrite semantics: only dst rows with incoming edges of relation r
            t_acc[:, c0:c0 + d_k] = jnp.where(has_edge, agg, t_acc[:, c0:c0 + d_k])

    @pl.when(jnp.logical_and(r == last_r, s == last_s))
    def _writeback():
        t_ref[...] = t_acc[...]


def edge_aggregate(q, k_stk, v_stk, bias_stk, flag_stk, n_heads, d_k):
    nd, dmodel = q.shape
    n_rel, ns_pad, _ = k_stk.shape
    tile_nd = _dst_tile(nd)
    tile_ns = _src_tile(ns_pad)
    grid = (pl.cdiv(nd, tile_nd), n_rel, pl.cdiv(ns_pad, tile_ns))
    kernel = functools.partial(_edge_kernel, n_heads=n_heads, d_k=d_k)
    return pl.pallas_call(
        kernel,
        out_shape=jax.ShapeDtypeStruct((nd, dmodel), jnp.float32),
        grid=grid,
        in_specs=[
            pl.BlockSpec((tile_nd, dmodel), lambda i, r, s: (i, 0)),       # q (flat)
            pl.BlockSpec((1, tile_ns, dmodel), lambda i, r, s: (r, s, 0)),  # K stack
            pl.BlockSpec((1, tile_ns, dmodel), lambda i, r, s: (r, s, 0)),  # V stack
            pl.BlockSpec((1, tile_nd, tile_ns), lambda i, r, s: (r, i, s)),  # mask bias
            pl.BlockSpec((1, tile_nd, 1), lambda i, r, s: (r, i, 0)),       # has-edge
        ],
        out_specs=pl.BlockSpec((tile_nd, dmodel), lambda i, r, s: (i, 0)),
        scratch_shapes=[
            pltpu.VMEM((tile_nd, dmodel), jnp.float32),    # t accumulator (relations)
            pltpu.VMEM((tile_nd, n_heads), jnp.float32),   # online-softmax running max
            pltpu.VMEM((tile_nd, n_heads), jnp.float32),   # online-softmax denom
            pltpu.VMEM((tile_nd, dmodel), jnp.float32),    # weighted-V accumulator
        ],
        compiler_params=pltpu.CompilerParams(
            dimension_semantics=("parallel", "arbitrary", "arbitrary"),
            vmem_limit_bytes=VMEM_LIMIT),
    )(q, k_stk, v_stk, bias_stk, flag_stk)


def _out_kernel(t_ref, x_ref, wa_ref, ba_ref, alpha_ref, o_ref):
    trans = jnp.dot(t_ref[...].astype(jnp.bfloat16), wa_ref[...],
                    preferred_element_type=jnp.float32) + ba_ref[...]
    x = x_ref[...]
    alpha = alpha_ref[0, 0]
    o_ref[...] = x + alpha * (trans - x)        # == trans*alpha + x*(1-alpha)


def out_project(t, x, wa_bf16, ba_f32, alpha):
    n, in_dim = x.shape
    out_dim = wa_bf16.shape[1]
    tile_n = _row_tile(n)
    grid = (pl.cdiv(n, tile_n),)
    return pl.pallas_call(
        _out_kernel,
        out_shape=jax.ShapeDtypeStruct((n, out_dim), jnp.float32),
        grid=grid,
        in_specs=[
            pl.BlockSpec((tile_n, t.shape[1]), lambda i: (i, 0)),
            pl.BlockSpec((tile_n, in_dim), lambda i: (i, 0)),
            pl.BlockSpec(wa_bf16.shape, lambda i: (0, 0)),
            pl.BlockSpec((1, out_dim), lambda i: (0, 0)),
            SMEM_SPEC,
        ],
        out_specs=pl.BlockSpec((tile_n, out_dim), lambda i: (i, 0)),
        compiler_params=pltpu.CompilerParams(
            dimension_semantics=("parallel",), vmem_limit_bytes=VMEM_LIMIT),
    )(t, x, wa_bf16, ba_f32, alpha)


# ------------------- host-side prep (run ONCE per layer) -------------------

def prepare_hgt_layer(params, graph, n_heads, d_k):
    """Fold relation matrices into K/V weights, build per-node-type wide projection
    matrices (width padded to a multiple of 128), and precompute per-dst-type stacked
    additive mask biases + has-edge flags.  All of this is parameter/graph algebra and
    is hoisted out of the per-call forward path."""
    out_dim = n_heads * d_k
    sqrt_dk = math.sqrt(d_k)
    cets = graph["canonical_etypes"]
    ntypes = list(graph["node_dict"].keys())

    def fold(w, b, rel):  # w:(in,D) b:(1,D) rel:(H,dk,dk) -> folded (in,D),(1,D), f32
        w_r = w.reshape(w.shape[0], n_heads, d_k)
        b_r = b.reshape(1, n_heads, d_k)
        wf = jnp.einsum('ihd,hde->ihe', w_r, rel).reshape(w.shape[0], out_dim)
        bf = jnp.einsum('ihd,hde->ihe', b_r, rel).reshape(1, out_dim)
        return wf, bf

    prep = {"w": {}, "b": {}, "cols": {}, "incoming": {}, "bias": {}, "flag": {},
            "ns_pad": {}, "wa": {}, "ba": {}, "alpha": {}}

    for nt in ntypes:
        tid = graph["node_dict"][nt]
        cols_w = [params["wq"][tid]]
        cols_b = [params["bq"][tid]]
        off = out_dim
        for (st, et, dt) in cets:
            if st != nt:
                continue
            rid = graph["edge_dict"][et]
            a_scaled = params["relation_att"][rid] * \
                (params["relation_pri"][rid] / sqrt_dk)[:, None, None]
            wkf, bkf = fold(params["wk"][tid], params["bk"][tid], a_scaled)
            wvf, bvf = fold(params["wv"][tid], params["bv"][tid],
                            params["relation_msg"][rid])
            cols_w += [wkf, wvf]
            cols_b += [bkf, bvf]
            prep["cols"][et] = (off, off + out_dim)      # k cols, v cols = k + out_dim
            off += 2 * out_dim
        w_cat = jnp.concatenate(cols_w, axis=1)
        b_cat = jnp.concatenate(cols_b, axis=1)
        w_pad = _round_up(w_cat.shape[1], 128)           # lane-dense, unmasked stores
        if w_pad > w_cat.shape[1]:
            w_cat = jnp.pad(w_cat, ((0, 0), (0, w_pad - w_cat.shape[1])))
            b_cat = jnp.pad(b_cat, ((0, 0), (0, w_pad - b_cat.shape[1])))
        prep["w"][nt] = w_cat.astype(jnp.bfloat16)       # fold kept in f32, cast last
        prep["b"][nt] = b_cat                            # f32 bias (added post-MXU)
        prep["wa"][nt] = params["wa"][tid].astype(jnp.bfloat16)
        prep["ba"][nt] = params["ba"][tid]
        prep["alpha"][nt] = jax.nn.sigmoid(params["skip"][tid]).reshape(1, 1)

    for nt in ntypes:   # incoming relations per destination type (canonical order)
        rels = [(st, et) for (st, et, dt) in cets if dt == nt]
        prep["incoming"][nt] = rels
        if not rels:
            continue
        nd = graph["num_nodes"][nt]
        max_ns = max(graph["num_nodes"][st] for (st, _) in rels)
        ns_pad = _round_up(max_ns, 8) if max_ns <= 512 else _round_up(max_ns, 512)
        prep["ns_pad"][nt] = ns_pad
        biases, flags = [], []
        for (st, et) in rels:
            m = np.zeros((nd, ns_pad), np.float32)
            src, dst = graph["edges"][et]
            m[np.asarray(dst), np.asarray(src)] = 1.0
            biases.append((m - 1.0) * 1e30)              # 0 on edges, -1e30 elsewhere
            flags.append((m.sum(axis=1, keepdims=True) > 0).astype(np.float32))
        prep["bias"][nt] = jnp.asarray(np.stack(biases), jnp.bfloat16)  # (R,Nd,Ns_pad)
        prep["flag"][nt] = jnp.asarray(np.stack(flags), jnp.float32)    # (R,Nd,1)
    return prep


# ------------------------------- layer glue --------------------------------

def native_hgt_layer(prep, graph, h_dict, n_heads, d_k):
    out_dim = n_heads * d_k

    # 1) one fused, row-tiled wide projection per node type.
    proj = {nt: fused_project(h_dict[nt], prep["w"][nt], prep["b"][nt])
            for nt in h_dict}

    # 2) per destination node type: ONE fused edge kernel over all incoming relations
    #    (grid axes: dst tiles "parallel", relations + src tiles "arbitrary").
    t = {}
    for nt in h_dict:
        rels = prep["incoming"][nt]
        nd = h_dict[nt].shape[0]
        if not rels:
            t[nt] = jnp.zeros((nd, out_dim), jnp.float32)
            continue
        ns_pad = prep["ns_pad"][nt]
        q = proj[nt][:, :out_dim]
        ks, vs = [], []
        for (st, et) in rels:
            ko, vo = prep["cols"][et]
            k_r = proj[st][:, ko:ko + out_dim]
            v_r = proj[st][:, vo:vo + out_dim]
            pad = ns_pad - k_r.shape[0]
            if pad:
                k_r = jnp.pad(k_r, ((0, pad), (0, 0)))
                v_r = jnp.pad(v_r, ((0, pad), (0, 0)))
            ks.append(k_r)
            vs.append(v_r)
        k_stk = jnp.stack(ks)   # (R, Ns_pad, D) bf16, flat lane-dense
        v_stk = jnp.stack(vs)
        t[nt] = edge_aggregate(q, k_stk, v_stk, prep["bias"][nt], prep["flag"][nt],
                               n_heads, d_k)

    # 3) output linear + sigmoid(skip) gated residual (row-tiled).
    out = {}
    for nt, x in h_dict.items():
        out[nt] = out_project(t[nt], x, prep["wa"][nt], prep["ba"][nt],
                              prep["alpha"][nt])
    return out


# ------------------------ deterministic params/graph -----------------------

def init_params(key, in_dim, out_dim, num_types, num_relations, n_heads):
    d_k = out_dim // n_heads
    ks = jax.random.split(key, 10)

    def lin_w(k, n, fan_in, fan_out):
        b = 1.0 / math.sqrt(fan_in)
        return jax.random.uniform(k, (n, fan_in, fan_out), jnp.float32, -b, b)

    def lin_b(k, n, fan_in, fan_out):
        b = 1.0 / math.sqrt(fan_in)
        return jax.random.uniform(k, (n, 1, fan_out), jnp.float32, -b, b)

    xav = math.sqrt(6.0 / (d_k + d_k))
    return {
        "wk": lin_w(ks[0], num_types, in_dim, out_dim),
        "bk": lin_b(ks[1], num_types, in_dim, out_dim),
        "wq": lin_w(ks[2], num_types, in_dim, out_dim),
        "bq": lin_b(ks[3], num_types, in_dim, out_dim),
        "wv": lin_w(ks[4], num_types, in_dim, out_dim),
        "bv": lin_b(ks[5], num_types, in_dim, out_dim),
        "wa": lin_w(ks[6], num_types, out_dim, out_dim),
        "ba": lin_b(ks[7], num_types, out_dim, out_dim),
        "relation_att": jax.random.uniform(ks[8], (num_relations, n_heads, d_k, d_k),
                                           jnp.float32, -xav, xav),
        "relation_msg": jax.random.uniform(ks[9], (num_relations, n_heads, d_k, d_k),
                                           jnp.float32, -xav, xav),
        "relation_pri": jnp.ones((num_relations, n_heads), jnp.float32),
        "skip": jnp.ones((num_types,), jnp.float32),
    }


def build_graph():
    num_nodes = {"paper": 8, "author": 8}
    node_dict = {"paper": 0, "author": 1}
    edge_dict = {"written-by": 0, "writes": 1, "cites": 2}
    canonical_etypes = [("paper", "written-by", "author"),
                        ("author", "writes", "paper"),
                        ("paper", "cites", "paper")]
    edges = {  # (src_ids, dst_ids), no parallel edges
        "written-by": ([0, 1, 2, 3, 4, 5, 6, 0, 1], [0, 0, 1, 2, 3, 4, 5, 6, 6]),
        "writes":     ([0, 0, 1, 2, 3, 4, 5, 6],    [0, 1, 1, 2, 3, 4, 5, 6]),
        "cites":      ([1, 2, 3, 4, 5],             [0, 0, 1, 2, 3]),
    }
    return dict(num_nodes=num_nodes, node_dict=node_dict, edge_dict=edge_dict,
                canonical_etypes=canonical_etypes, edges=edges)


# --------------------- torch-faithful numpy reference -----------------------

def reference_forward(params, graph, h_dict, n_heads, d_k):
    p = {k: np.asarray(v) for k, v in params.items()}
    h = {k: np.asarray(v) for k, v in h_dict.items()}
    out_dim = n_heads * d_k
    sqrt_dk = math.sqrt(d_k)
    K, Q, V = {}, {}, {}
    for nt, x in h.items():
        tid = graph["node_dict"][nt]
        K[nt] = (x @ p["wk"][tid] + p["bk"][tid]).reshape(-1, n_heads, d_k)
        Q[nt] = (x @ p["wq"][tid] + p["bq"][tid]).reshape(-1, n_heads, d_k)
        V[nt] = (x @ p["wv"][tid] + p["bv"][tid]).reshape(-1, n_heads, d_k)
    t = {nt: np.zeros((x.shape[0], out_dim), np.float32) for nt, x in h.items()}
    for (srctype, etype, dsttype) in graph["canonical_etypes"]:
        rid = graph["edge_dict"][etype]
        src = np.asarray(graph["edges"][etype][0])
        dst = np.asarray(graph["edges"][etype][1])
        k_src, q_dst, v_src = K[srctype][src], Q[dsttype][dst], V[srctype][src]
        A, M = p["relation_att"][rid], p["relation_msg"][rid]
        pri = p["relation_pri"][rid]
        k_trans = np.einsum('ehd,hdk->ehk', k_src, A)
        att = (q_dst * k_trans).sum(-1) * pri / sqrt_dk
        v_trans = np.einsum('ehd,hdk->ehk', v_src, M)
        for i in range(h[dsttype].shape[0]):
            idx = np.nonzero(dst == i)[0]
            if len(idx) == 0:
                continue
            a_i = att[idx]
            a_i = np.exp(a_i - a_i.max(axis=0, keepdims=True))
            a_i = a_i / a_i.sum(axis=0, keepdims=True)
            t[dsttype][i] = (a_i[..., None] * v_trans[idx]).sum(axis=0).reshape(-1)
    out = {}
    for nt, x in h.items():
        tid = graph["node_dict"][nt]
        alpha = 1.0 / (1.0 + np.exp(-p["skip"][tid]))
        trans = t[nt] @ p["wa"][tid] + p["ba"][tid]
        out[nt] = trans * alpha + x * (1 - alpha)
    return out


# ----------------------------------- main -----------------------------------

if __name__ == "__main__":
    in_dim = out_dim = 32
    n_heads = 4
    d_k = out_dim // n_heads
    num_types = 2
    num_relations = 3

    key = jax.random.PRNGKey(0)
    kpar, kp, ka = jax.random.split(key, 3)
    params = init_params(kpar, in_dim, out_dim, num_types, num_relations, n_heads)
    graph = build_graph()
    h_dict = {
        "paper": jax.random.normal(kp, (graph["num_nodes"]["paper"], in_dim), jnp.float32),
        "author": jax.random.normal(ka, (graph["num_nodes"]["author"], in_dim), jnp.float32),
    }

    prep = prepare_hgt_layer(params, graph, n_heads, d_k)   # once per layer
    out = native_hgt_layer(prep, graph, h_dict, n_heads, d_k)
    out = {k: jax.block_until_ready(v) for k, v in out.items()}

    ref = reference_forward(params, graph, h_dict, n_heads, d_k)
    for nt in out:
        assert out[nt].shape == (graph["num_nodes"][nt], out_dim)
        np.testing.assert_allclose(np.asarray(out[nt]), ref[nt], rtol=5e-2, atol=5e-2)

    print("KERNEL_OK")
</pallas_src>

<mosaic_0001>
module attributes {stable_mosaic.version = 11 : i64} {
  func.func @_proj_kernel(%arg0: i32, %arg1: memref<8x32xf32, #tpu.memory_space<vmem>>, %arg2: memref<32x256xbf16, #tpu.memory_space<vmem>>, %arg3: memref<1x256xf32, #tpu.memory_space<vmem>>, %arg4: memref<8x256xbf16, #tpu.memory_space<vmem>>) attributes {dimension_semantics = [#tpu.dimension_semantics<parallel>], iteration_bounds = array<i64: 1>, scalar_prefetch = 0 : i64, scratch_operands = 0 : i64, tpu.core_type = #tpu.core_type<tc>, window_params = [{transform_indices = @transform_0, window_bounds = array<i64: 8, 32>}, {pipeline_mode = #tpu.pipeline_mode<synchronous>, transform_indices = @transform_1, window_bounds = array<i64: 32, 256>}, {pipeline_mode = #tpu.pipeline_mode<synchronous>, transform_indices = @transform_2, window_bounds = array<i64: 1, 256>}, {transform_indices = @transform_3, window_bounds = array<i64: 8, 256>}]} {
    %c0 = arith.constant 0 : index
    %c0_0 = arith.constant 0 : index
    %0 = vector.load %arg1[%c0, %c0_0] : memref<8x32xf32, #tpu.memory_space<vmem>>, vector<8x32xf32>
    %1 = arith.truncf %0 : vector<8x32xf32> to vector<8x32xbf16>
    %c0_1 = arith.constant 0 : index
    %c0_2 = arith.constant 0 : index
    %2 = vector.load %arg2[%c0_1, %c0_2] : memref<32x256xbf16, #tpu.memory_space<vmem>>, vector<32x256xbf16>
    %cst = arith.constant dense<0.000000e+00> : vector<8x256xf32>
    %3 = tpu.matmul %1, %2, %cst {dimension_numbers = #tpu.dot_dimension_numbers<[1], [0], [0], [1], [0, 0, 1, 1], [], []>} : vector<8x32xbf16>, vector<32x256xbf16>, vector<8x256xf32> -> vector<8x256xf32>
    %c0_3 = arith.constant 0 : index
    %c0_4 = arith.constant 0 : index
    %4 = vector.load %arg3[%c0_3, %c0_4] : memref<1x256xf32, #tpu.memory_space<vmem>>, vector<1x256xf32>
    %5 = vector.broadcast %4 : vector<1x256xf32> to vector<8x256xf32>
    %6 = arith.addf %3, %5 : vector<8x256xf32>
    %7 = arith.truncf %6 : vector<8x256xf32> to vector<8x256xbf16>
    %c0_5 = arith.constant 0 : index
    %c0_6 = arith.constant 0 : index
    %8 = vector.load %arg4[%c0_5, %c0_6] : memref<8x256xbf16, #tpu.memory_space<vmem>>, vector<8x256xbf16>
    tpu.vector_store %arg4[%c0_5, %c0_6], %7 {strides = array<i32>} : memref<8x256xbf16, #tpu.memory_space<vmem>>, vector<8x256xbf16>,
    return
  }
  func.func @transform_0(%arg0: i32) -> (i32, i32) {
    %c0_i32 = arith.constant 0 : i32
    %c0_i32_0 = arith.constant 0 : i32
    return %arg0, %c0_i32 : i32, i32
  }
  func.func @transform_1(%arg0: i32) -> (i32, i32) {
    %c0_i32 = arith.constant 0 : i32
    %c0_i32_0 = arith.constant 0 : i32
    %c0_i32_1 = arith.constant 0 : i32
    return %c0_i32, %c0_i32_0 : i32, i32
  }
  func.func @transform_2(%arg0: i32) -> (i32, i32) {
    %c0_i32 = arith.constant 0 : i32
    %c0_i32_0 = arith.constant 0 : i32
    %c0_i32_1 = arith.constant 0 : i32
    return %c0_i32, %c0_i32_0 : i32, i32
  }
  func.func @transform_3(%arg0: i32) -> (i32, i32) {
    %c0_i32 = arith.constant 0 : i32
    %c0_i32_0 = arith.constant 0 : i32
    return %arg0, %c0_i32 : i32, i32
  }
}

</mosaic_0001>

<bundles_post_ra>
// kernel: tpu_custom_call.1
= control target key start
LH: loop header
LB: loop body
LE: loop exit
PB: predicated region body
PF: predicated region fallthrough
CT: control target
= control target key end

     0   :  { %8 = vsyncpa [#allocation3], 0  ;;  %s313_s0 = inlined_call_operand.hbm [shape: f32[8,32], index: 0, kind: input, shape index: {}]   ;;  %s314_s1 = inlined_call_operand.hbm [shape: bf16[32,256], index: 1, kind: input, shape index: {}]   ;;  %s315_s2 = inlined_call_operand.vmem [shape: f32[1,256], index: 2, kind: input, shape index: {}]   ;;  %s316_s3 = inlined_call_operand.hbm [shape: bf16[8,256], index: 3, kind: output, shape index: {}]  }
   0x1   :  { %9 = vsyncpa [#allocation6], 0 }
   0x2   :  { %10 = vsyncpa [#allocation4], 0  ;;  %s241_s12 = smov [#allocation2]   ;;  %s242_s14 = smov [#allocation5]  }
   0x3   :  { %s17_s13 = sshll.u32 %s241_s12, 4  ;;  %s26_s15 = sshll.u32 %s242_s14, 4  ;;  %s18_s13 = int_to_ptr.vmem [resolvable:$true] %s17_s13  ;;  %s267_s15 = int_to_ptr.vmem [resolvable:$true] %s26_s15 }
   0x4   :  { %s169_s18 = scalar_lea.hbm %s313_s0, 128 }
   0x5   :  { %p170_p0 = scmp.ne.s32.totalorder %s313_s0, %s169_s18  ;;  %p173_p1 = scmp.lt.u32.totalorder %s169_s18, %s313_s0 }
   0x7   :  { %p175_p2 = pnand %p173_p1, %p170_p0 }
   0x9   :  { %178 = shalt.err (!%p175_p2)
}
   0xa   :  { %s179_s23 = scalar_lea.vmem %s18_s13, 128  ;;  %p184_p4 = scmp.lt.s32.totalorder %s18_s13, %s18_s13 }
   0xb   :  { %p180_p3 = scmp.ne.s32.totalorder %s18_s13, %s179_s23  ;;  %p185_p5 = scmp.lt.s32.totalorder %s179_s23, %s179_s23 }
   0xd   :  { %p186_p6 = por %p185_p5, %p184_p4 }
   0xf   :  { %p187_p7 = pnand %p186_p6, %p180_p3 }
  0x11   :  { %190 = shalt.err (!%p187_p7)
}
  0x12   :  { %20 = dma.hbm_to_vmem [thread:$0]  %s313_s0, 128, %s18_s13, [#allocation3]  }
  0x13   :  { %s191_s28 = scalar_lea.hbm %s314_s1, 512 }
  0x14   :  { %p192_p8 = scmp.ne.s32.totalorder %s314_s1, %s191_s28  ;;  %p195_p9 = scmp.lt.u32.totalorder %s191_s28, %s314_s1 }
  0x16   :  { %p197_p10 = pnand %p195_p9, %p192_p8 }
  0x18   :  { %200 = shalt.err (!%p197_p10)
}
  0x19   :  { %s201_s6 = scalar_lea.vmem %s267_s15, 512  ;;  %p206_p12 = scmp.lt.s32.totalorder %s267_s15, %s267_s15 }
  0x1a   :  { %p202_p11 = scmp.ne.s32.totalorder %s267_s15, %s201_s6  ;;  %p207_p13 = scmp.lt.s32.totalorder %s201_s6, %s201_s6 }
  0x1c   :  { %p208_p0 = por %p207_p13, %p206_p12 }
  0x1e   :  { %p209_p1 = pnand %p208_p0, %p202_p11 }
  0x20   :  { %212 = shalt.err (!%p209_p1)
}
  0x21   :  { %s243_s0 = smov 128   ;;  %s244_s7 = smov 8  }
  0x22   :  { %32 = dma.hbm_to_vmem [thread:$0]  %s314_s1, 512, %s267_s15, [#allocation6], %s243_s0, %s243_s0, %s244_s7  }
  0x23   :  { %235 = dma.done.wait [#allocation3], 128  }
  0x24   :  { %236 = vsyncadd [#allocation3], 4294967168 }
  0x25   :  { %237 = dma.done.wait [#allocation6], 512  }
  0x26   :  { %238 = vsyncadd [#allocation6], 4294966784  ;;  %v245_v0 = vmov 0   ;;  %v163_v1 = vld [vmem:[#allocation5 + $0x4] ss:$8 sps:$4 sm:$0xff]   ;;  %v42_v5 = vld [vmem:[#allocation2] sm:$0xff]  ;;  %v50_v7 = vlaneseq }
  0x27   :  { %116 = vmatprep.mubr.bf16.mxu0 %v245_v0  ;;  %v165_v2 = vld [vmem:[#allocation5] ss:$8 sps:$4 sm:$0xff]   ;;  %84 = vmatprep.subr.bf16.mxu0 %v163_v1  ;;  %v166_v3 = vld [vmem:[#allocation5 + $0x14] ss:$8 sps:$4 sm:$0xff]   ;;  %v168_v4 = vld [vmem:[#allocation5 + $0x10] ss:$8 sps:$4 sm:$0xff]   ;;  %v43_v6 = vpack.c.bf16 %v42_v5, %v42_v5 }
  0x28   :  { %85 = vmatpush1.bf16.msra.mxu0 %v165_v2  ;;  %vm80_vm0 = vcmask 261120   ;;  %v51_v8 = vshrl.u32 %v50_v7, 7  ;;  %v48_v10 = vld [vmem:[%s315_s2] sm:$0x3]  ;;  %s246_s11 = smov [#allocation7]  }
  0x29   :  { %86 = vmatprep.subr.bf16.mxu0 %v166_v3  ;;  %s140_s12 = sshll.u32 %s246_s11, 4  ;;  %s141_s12 = int_to_ptr.vmem [resolvable:$true] %s140_s12 }
  0x2a   :  { %v52_v9 = vsub.s32 0, %v51_v8  ;;  %v56_v11 = vsub.s32 1, %v51_v8  ;;  %s213_s13 = scalar_lea.vmem %s141_s12, 128  ;;  %p218_p3 = scmp.lt.s32.totalorder %s141_s12, %s141_s12 }
  0x2b   :  { %p214_p2 = scmp.ne.s32.totalorder %s141_s12, %s213_s13  ;;  %p219_p4 = scmp.lt.s32.totalorder %s213_s13, %s213_s13 }
  0x2c   :  { %87 = vmatpush1.bf16.msra.mxu0 %v168_v4  ;;  %v53_v12 = vrot.slane %v48_v10, %v52_v9  ;;  %v57_v13 = vrot.slane %v48_v10, %v56_v11 }
  0x2d   :  { %p220_p5 = por %p219_p4, %p218_p3 }
  0x2f   :  { %154 = vmatmul.mubr.msk.bf16.vlgmr.msra.gmra.mrb[0].mxu0 %vm80_vm0, %v43_v6  ;;  %p221_p6 = pnand %p220_p5, %p214_p2 }
 0x102   :  { %v118_v14 = vpop.f32.mrb[0].mxu0 }
 0x103   :  { %v119_v15 = vadd.f32 %v118_v14, %v53_v12  ;;  %v120_v16 = vpop.f32.mrb[1].mxu0 }
 0x104   :  { %v121_v17 = vadd.f32 %v120_v16, %v57_v13  ;;  %v122_v18 = vpop.f32.mrb[2].mxu0 }
 0x105   :  { %v123_v19 = vpop.f32.mrb[3].mxu0 }
 0x106   :  { %v156_v20 = vpack.c.bf16 %v121_v17, %v119_v15 }
 0x108   :  { %133 = vst [vmem:[#allocation7] sm:$0xff] %v156_v20 }
 0x109   :  { %224 = shalt.err (!%p221_p6)
}
 0x10a   :  { %s225_s15 = scalar_lea.hbm %s316_s3, 128 }
 0x10b   :  { %p226_p7 = scmp.ne.s32.totalorder %s316_s3, %s225_s15  ;;  %p229_p8 = scmp.lt.u32.totalorder %s225_s15, %s316_s3 }
 0x10d   :  { %p231_p9 = pnand %p229_p8, %p226_p7 }
 0x10f   :  { %234 = shalt.err (!%p231_p9)
}
 0x110   :  { %143 = dma.vmem_to_hbm [thread:$0]  %s141_s12, 128, %s316_s3, [#allocation4]  }
 0x111   :  { %239 = dma.done.wait [#allocation4], 128  }
 0x112   :  { %240 = vsyncadd [#allocation4], 4294967168 }
 0x113   :  { %147 = vsyncpa [#allocation3], 1 }
 0x114   :  { %148 = vsyncpa [#allocation6], 1 }
 0x115   :  { %149 = vsyncpa [#allocation4], 1 }

</bundles_post_ra>
